<compile_context>
chip_gen: v6e
topology: v6e:2x2x1
jax: 0.10.0
libtpu: 0.0.40
codegen_flags: <defaults>
</compile_context>

<pallas_src>
import numpy as np
import jax
import jax.numpy as jnp
from jax import lax
from jax.experimental import pallas as pl
from jax.experimental.pallas import tpu as pltpu


def _round_up(x, m):
    return (x + m - 1) // m * m


# ---------------------------------------------------------------------------
# Kernel 1: weighted cross-entropy (celoss), per-example losses.
#   loss_i = weight[t_i] * (logsumexp(logits_i) - logits_i[t_i])
# Layout: [C, TN] per block -> reductions over the sublane axis (C small),
# examples dense on the lane axis.
# ---------------------------------------------------------------------------
def _ce_kernel(logits_ref, tgt_ref, w_ref, out_ref):
    x = logits_ref[...].astype(jnp.float32)            # [C, TN]
    t = tgt_ref[...]                                    # [1, TN] int32 (-1 = pad)
    w = w_ref[...].astype(jnp.float32)                  # [C, 1] class weights
    c, tn = x.shape

    row = lax.broadcasted_iota(jnp.int32, (c, tn), 0)
    sel = (row == t).astype(jnp.float32)                 # one-hot over sublanes

    m = jnp.max(x, axis=0, keepdims=True)                 # [1, TN]
    lse = m + jnp.log(jnp.sum(jnp.exp(x - m), axis=0, keepdims=True))
    picked = jnp.sum(sel * x, axis=0, keepdims=True)      # logits[t]
    wsel = jnp.sum(sel * w, axis=0, keepdims=True)        # weight[t] (0 for padded cols)
    out_ref[...] = wsel * (lse - picked)                   # [1, TN]


def ce_loss_pallas(logits_flat, target_classes_flat, empty_weight, *, tile_n=512):
    """logits_flat: [N, C] (any float dtype), targets: [N] int, weight: [C]."""
    n, c = logits_flat.shape

    # Lane-dense layout: N on lanes.  (Layout plumbing only; no compute hoist.)
    logits_t = jnp.transpose(logits_flat)                 # [C, N]
    tn = tile_n if n > tile_n else _round_up(n, 128)
    n_pad = _round_up(n, tn)

    tgt = jnp.asarray(target_classes_flat, jnp.int32)
    if n_pad != n:
        logits_t = jnp.pad(logits_t, ((0, 0), (0, n_pad - n)))
        tgt = jnp.pad(tgt, (0, n_pad - n), constant_values=-1)
    tgt = tgt.reshape(1, n_pad)
    w = jnp.asarray(empty_weight, jnp.float32).reshape(c, 1)

    per_col = pl.pallas_call(
        _ce_kernel,
        out_shape=jax.ShapeDtypeStruct((1, n_pad), jnp.float32),
        grid=(n_pad // tn,),
        in_specs=[
            pl.BlockSpec((c, tn), lambda i: (0, i)),       # logits tile
            pl.BlockSpec((1, tn), lambda i: (0, i)),       # target classes tile
            pl.BlockSpec((c, 1), lambda i: (0, 0)),        # class weights (resident)
        ],
        out_specs=pl.BlockSpec((1, tn), lambda i: (0, i)),
        compiler_params=pltpu.CompilerParams(
            dimension_semantics=("parallel",)),
    )(logits_t, tgt, w)

    # torch: F.cross_entropy(..., weight, reduction='none').mean()
    # -> per-sample weighted losses, then an UNWEIGHTED mean over N = B*Q.
    return jnp.sum(per_col) / jnp.float32(n)


# ---------------------------------------------------------------------------
# Kernel 2: boundary loss with in-kernel gather via scalar prefetch.
#   bce(p, y) = -(y*log(p) + (1-y)*log(1-p))   (logs clamped at -100, as torch)
#             = -log(1-p) + y*(log(1-p) - log(p))     (y one-hot)
# Only log(1-p) is a full-tile transcendental; log(p) is taken at the single
# target column (a [1,1,1] op) per side.
# ---------------------------------------------------------------------------
def _boundary_kernel(rows_ref, bidx_ref, tl_ref, tr_ref,
                     p_l_ref, p_r_ref, mask_ref, out_ref):
    m = pl.program_id(0)
    p_l = p_l_ref[...].astype(jnp.float32)               # [1, 1, S]
    p_r = p_r_ref[...].astype(jnp.float32)
    msk = mask_ref[...].astype(jnp.float32)
    s = p_l.shape[-1]
    col = lax.broadcasted_iota(jnp.int32, (1, 1, s), 2)
    t_l = tl_ref[m]
    t_r = tr_ref[m]

    def side(p, t):
        sel = (col == t).astype(jnp.float32)              # [1,1,S] one-hot
        log1mp = jnp.maximum(jnp.log(1.0 - p), -100.0)     # full-tile log
        pt = jnp.sum(sel * p, axis=-1, keepdims=True)      # p at target col [1,1,1]
        logpt = jnp.maximum(jnp.log(pt), -100.0)
        # = -log(1-p) everywhere, except -log(p) at the target column
        return -log1mp + sel * (log1mp - logpt)

    out_ref[...] = (side(p_l, t_l) + side(p_r, t_r)) * msk


def boundary_loss_pallas(pred_left, pred_right, token_mask,
                         rows, bidx, tgt_left, tgt_right, num_spans):
    """pred_left/right: [B, Q, S]; token_mask: [B, S]; rows/bidx/tgt_*: [M] int32."""
    b, q, s = pred_left.shape
    m_rows = int(rows.shape[0])

    p_l3 = pred_left.reshape(b * q, 1, s)
    p_r3 = pred_right.reshape(b * q, 1, s)
    tm3 = token_mask.reshape(b, 1, s)

    grid_spec = pltpu.PrefetchScalarGridSpec(
        num_scalar_prefetch=4,
        grid=(m_rows,),
        in_specs=[
            pl.BlockSpec((1, 1, s), lambda i, rows, bidx, tl, tr: (rows[i], 0, 0)),
            pl.BlockSpec((1, 1, s), lambda i, rows, bidx, tl, tr: (rows[i], 0, 0)),
            pl.BlockSpec((1, 1, s), lambda i, rows, bidx, tl, tr: (bidx[i], 0, 0)),
        ],
        out_specs=pl.BlockSpec((1, 1, s), lambda i, rows, bidx, tl, tr: (i, 0, 0)),
    )
    per_tok = pl.pallas_call(
        _boundary_kernel,
        out_shape=jax.ShapeDtypeStruct((m_rows, 1, s), jnp.float32),
        grid_spec=grid_spec,
        compiler_params=pltpu.CompilerParams(
            dimension_semantics=("arbitrary",)),
    )(rows, bidx, tgt_left, tgt_right, p_l3, p_r3, tm3)

    return jnp.sum(per_tok) / jnp.float32(num_spans)


# ---------------------------------------------------------------------------
# Criterion forward (index/permutation glue in numpy, reductions in Pallas)
# ---------------------------------------------------------------------------
def criterion_forward(outputs, targets, indices, *, entity_type_count,
                      nil_weight, type_loss="celoss",
                      losses=("labels", "boundary")):
    # TODO(synk): Hungarian matcher (scipy linear_sum_assignment) has no Pallas
    # equivalent; `indices` must be supplied precomputed.
    pred_logits = outputs["pred_logits"]      # [B, Q, C]
    B, Q, C = pred_logits.shape
    assert C == entity_type_count
    sizes = list(targets["sizes"])
    num_spans = float(sum(sizes))

    # class weights (empty_weight buffer)
    empty_weight = np.ones(C, np.float32)
    if nil_weight == -1:
        denom = B * Q - num_spans
        empty_weight[0] = num_spans / max(denom, 1.0)   # guard div-by-zero
    else:
        empty_weight[0] = nil_weight

    # split per-batch ground truth
    splits = np.cumsum(sizes)[:-1]
    labels_split = np.split(np.asarray(targets["labels"]), splits)
    gt_left_split = np.split(np.asarray(targets["gt_left"]), splits)
    gt_right_split = np.split(np.asarray(targets["gt_right"]), splits)

    # _get_src_permutation_idx + target_classes construction (host side)
    target_classes = np.zeros((B, Q), np.int32)
    batch_idx, src_idx = [], []
    tgt_left_list, tgt_right_list = [], []
    for b, (src, tgt) in enumerate(indices):
        src = np.asarray(src, np.int32)
        tgt = np.asarray(tgt, np.int32)
        target_classes[b, src] = labels_split[b][tgt]
        batch_idx.append(np.full_like(src, b))
        src_idx.append(src)
        tgt_left_list.append(gt_left_split[b][tgt])
        tgt_right_list.append(gt_right_split[b][tgt])
    batch_idx = np.concatenate(batch_idx).astype(np.int32)
    src_idx = np.concatenate(src_idx).astype(np.int32)
    target_spans_left = np.concatenate(tgt_left_list).astype(np.int32)
    target_spans_right = np.concatenate(tgt_right_list).astype(np.int32)

    out = {}

    if "labels" in losses:
        assert type_loss == "celoss"  # TODO(synk): 'bceloss' variant not implemented
        logits_flat = pred_logits.reshape(B * Q, C)
        out["loss_ce"] = ce_loss_pallas(
            logits_flat,
            target_classes.reshape(-1),
            empty_weight)

    if "boundary" in losses:
        M = batch_idx.shape[0]
        if M == 0 or num_spans == 0:
            # TODO(synk): torch would divide by num_spans=0 here (inf/nan); guard instead.
            out["loss_boundary"] = jnp.float32(0.0)
        else:
            rows = (batch_idx.astype(np.int64) * Q + src_idx).astype(np.int32)
            out["loss_boundary"] = boundary_loss_pallas(
                outputs["pred_left"], outputs["pred_right"], outputs["token_mask"],
                jnp.asarray(rows), jnp.asarray(batch_idx),
                jnp.asarray(target_spans_left), jnp.asarray(target_spans_right),
                num_spans)

    return out, indices


# ---------------------------------------------------------------------------
# Pure-numpy reference (for sanity check)
# ---------------------------------------------------------------------------
def _reference(outputs, targets, indices, entity_type_count, nil_weight):
    pred_logits = np.asarray(outputs["pred_logits"], np.float32)
    B, Q, C = pred_logits.shape
    sizes = list(targets["sizes"])
    num_spans = float(sum(sizes))
    empty_weight = np.ones(C, np.float32)
    empty_weight[0] = nil_weight
    splits = np.cumsum(sizes)[:-1]
    labels_split = np.split(np.asarray(targets["labels"]), splits)
    gt_left_split = np.split(np.asarray(targets["gt_left"]), splits)
    gt_right_split = np.split(np.asarray(targets["gt_right"]), splits)
    target_classes = np.zeros((B, Q), np.int32)
    bi, si, tl, tr = [], [], [], []
    for b, (src, tgt) in enumerate(indices):
        target_classes[b, np.asarray(src)] = labels_split[b][np.asarray(tgt)]
        bi.append(np.full(len(src), b)); si.append(np.asarray(src))
        tl.append(gt_left_split[b][np.asarray(tgt)])
        tr.append(gt_right_split[b][np.asarray(tgt)])
    bi = np.concatenate(bi); si = np.concatenate(si)
    tl = np.concatenate(tl); tr = np.concatenate(tr)
    # weighted CE (reduction='none' then unweighted mean, as in torch code)
    lf = pred_logits.reshape(-1, C)
    tc = target_classes.reshape(-1)
    lse = np.log(np.exp(lf - lf.max(-1, keepdims=True)).sum(-1)) + lf.max(-1)
    ce = empty_weight[tc] * (lse - lf[np.arange(lf.shape[0]), tc])
    loss_ce = ce.mean()
    # boundary
    p_l = np.asarray(outputs["pred_left"])[bi, si]
    p_r = np.asarray(outputs["pred_right"])[bi, si]
    mask = np.asarray(outputs["token_mask"])[bi]
    S = p_l.shape[-1]
    yl = np.eye(S, dtype=np.float32)[tl]
    yr = np.eye(S, dtype=np.float32)[tr]
    bce = lambda p, y: -(y * np.maximum(np.log(p), -100.0)
                         + (1 - y) * np.maximum(np.log(1 - p), -100.0))
    loss_b = ((bce(p_l, yl) + bce(p_r, yr)) * mask).sum() / num_spans
    return {"loss_ce": loss_ce, "loss_boundary": loss_b}


if __name__ == "__main__":
    key = jax.random.PRNGKey(0)
    B, Q, C, S = 2, 8, 8, 16          # batch, queries/spans, entity types, seq len

    k1, k2, k3, k4 = jax.random.split(key, 4)
    pred_logits = jax.random.normal(k1, (B, Q, C), jnp.float32)
    pred_left = jax.nn.sigmoid(jax.random.normal(k2, (B, Q, S), jnp.float32))
    pred_right = jax.nn.sigmoid(jax.random.normal(k3, (B, Q, S), jnp.float32))
    token_mask = jnp.concatenate(
        [jnp.ones((B, 12), jnp.float32), jnp.zeros((B, S - 12), jnp.float32)], axis=1)

    outputs = {"pred_logits": pred_logits, "pred_left": pred_left,
               "pred_right": pred_right, "token_mask": token_mask}

    # ground truth: sizes [3, 2] -> total 5 spans
    targets = {
        "labels":  np.array([2, 1, 5, 3, 4], np.int32),
        "gt_left": np.array([0, 3, 7, 1, 5], np.int32),
        "gt_right": np.array([2, 4, 9, 2, 8], np.int32),
        "sizes": [3, 2],
    }
    # precomputed hungarian assignment: (pred indices, gt indices) per batch
    indices = [(np.array([1, 4, 6]), np.array([0, 2, 1])),
               (np.array([0, 3]),    np.array([1, 0]))]

    losses, _ = criterion_forward(
        outputs, targets, indices,
        entity_type_count=C, nil_weight=0.1, type_loss="celoss",
        losses=("labels", "boundary"))
    losses = {k: jax.block_until_ready(v) for k, v in losses.items()}

    ref = _reference(outputs, targets, indices, C, 0.1)
    assert np.allclose(float(losses["loss_ce"]), ref["loss_ce"], atol=1e-4), \
        (float(losses["loss_ce"]), ref["loss_ce"])
    assert np.allclose(float(losses["loss_boundary"]), ref["loss_boundary"], atol=1e-4), \
        (float(losses["loss_boundary"]), ref["loss_boundary"])

    print("KERNEL_OK")
</pallas_src>

<mosaic_0001>
module attributes {stable_mosaic.version = 11 : i64} {
  func.func @_ce_kernel(%arg0: i32, %arg1: memref<8x128xf32, #tpu.memory_space<vmem>>, %arg2: memref<1x128xi32, #tpu.memory_space<vmem>>, %arg3: memref<8x1xf32, #tpu.memory_space<vmem>>, %arg4: memref<1x128xf32, #tpu.memory_space<vmem>>) attributes {dimension_semantics = [#tpu.dimension_semantics<parallel>], iteration_bounds = array<i64: 1>, scalar_prefetch = 0 : i64, scratch_operands = 0 : i64, tpu.core_type = #tpu.core_type<tc>, window_params = [{transform_indices = @transform_0, window_bounds = array<i64: 8, 128>}, {transform_indices = @transform_1, window_bounds = array<i64: 1, 128>}, {pipeline_mode = #tpu.pipeline_mode<synchronous>, transform_indices = @transform_2, window_bounds = array<i64: 8, 1>}, {transform_indices = @transform_3, window_bounds = array<i64: 1, 128>}]} {
    %c0 = arith.constant 0 : index
    %c0_0 = arith.constant 0 : index
    %0 = vector.load %arg1[%c0, %c0_0] : memref<8x128xf32, #tpu.memory_space<vmem>>, vector<8x128xf32>
    %c0_1 = arith.constant 0 : index
    %c0_2 = arith.constant 0 : index
    %1 = vector.load %arg2[%c0_1, %c0_2] : memref<1x128xi32, #tpu.memory_space<vmem>>, vector<1x128xi32>
    %c0_3 = arith.constant 0 : index
    %c0_4 = arith.constant 0 : index
    %2 = vector.load %arg3[%c0_3, %c0_4] : memref<8x1xf32, #tpu.memory_space<vmem>>, vector<8x1xf32>
    %3 = tpu.iota {dimensions = array<i32: 0>} : vector<8x128xi32>
    %4 = vector.broadcast %1 : vector<1x128xi32> to vector<8x128xi32>
    %5 = arith.cmpi eq, %3, %4 : vector<8x128xi32>
    %6 = arith.extui %5 : vector<8x128xi1> to vector<8x128xi32>
    %7 = arith.sitofp %6 : vector<8x128xi32> to vector<8x128xf32>
    %cst = arith.constant dense<0xFF800000> : vector<128xf32>
    %8 = vector.multi_reduction <maximumf>, %0, %cst [0] : vector<8x128xf32> to vector<128xf32>
    %9 = vector.shape_cast %8 : vector<128xf32> to vector<1x128xf32>
    %10 = vector.broadcast %9 : vector<1x128xf32> to vector<8x128xf32>
    %11 = arith.subf %0, %10 : vector<8x128xf32>
    %12 = math.exp %11 : vector<8x128xf32>
    %cst_5 = arith.constant dense<0.000000e+00> : vector<128xf32>
    %13 = vector.multi_reduction <add>, %12, %cst_5 [0] : vector<8x128xf32> to vector<128xf32>
    %14 = vector.shape_cast %13 : vector<128xf32> to vector<1x128xf32>
    %15 = math.log %14 : vector<1x128xf32>
    %16 = arith.addf %9, %15 : vector<1x128xf32>
    %17 = arith.mulf %7, %0 : vector<8x128xf32>
    %cst_6 = arith.constant dense<0.000000e+00> : vector<128xf32>
    %18 = vector.multi_reduction <add>, %17, %cst_6 [0] : vector<8x128xf32> to vector<128xf32>
    %19 = vector.shape_cast %18 : vector<128xf32> to vector<1x128xf32>
    %20 = vector.broadcast %2 : vector<8x1xf32> to vector<8x128xf32>
    %21 = arith.mulf %7, %20 : vector<8x128xf32>
    %cst_7 = arith.constant dense<0.000000e+00> : vector<128xf32>
    %22 = vector.multi_reduction <add>, %21, %cst_7 [0] : vector<8x128xf32> to vector<128xf32>
    %23 = vector.shape_cast %22 : vector<128xf32> to vector<1x128xf32>
    %24 = arith.subf %16, %19 : vector<1x128xf32>
    %25 = arith.mulf %23, %24 : vector<1x128xf32>
    %c0_8 = arith.constant 0 : index
    %c0_9 = arith.constant 0 : index
    %26 = vector.load %arg4[%c0_8, %c0_9] : memref<1x128xf32, #tpu.memory_space<vmem>>, vector<1x128xf32>
    tpu.vector_store %arg4[%c0_8, %c0_9], %25 {strides = array<i32>} : memref<1x128xf32, #tpu.memory_space<vmem>>, vector<1x128xf32>,
    return
  }
  func.func @transform_0(%arg0: i32) -> (i32, i32) {
    %c0_i32 = arith.constant 0 : i32
    %c0_i32_0 = arith.constant 0 : i32
    return %c0_i32, %arg0 : i32, i32
  }
  func.func @transform_1(%arg0: i32) -> (i32, i32) {
    %c0_i32 = arith.constant 0 : i32
    %c0_i32_0 = arith.constant 0 : i32
    return %c0_i32, %arg0 : i32, i32
  }
  func.func @transform_2(%arg0: i32) -> (i32, i32) {
    %c0_i32 = arith.constant 0 : i32
    %c0_i32_0 = arith.constant 0 : i32
    %c0_i32_1 = arith.constant 0 : i32
    return %c0_i32, %c0_i32_0 : i32, i32
  }
  func.func @transform_3(%arg0: i32) -> (i32, i32) {
    %c0_i32 = arith.constant 0 : i32
    %c0_i32_0 = arith.constant 0 : i32
    return %c0_i32, %arg0 : i32, i32
  }
}

</mosaic_0001>

<bundles_post_ra>
// kernel: tpu_custom_call.1
= control target key start
LH: loop header
LB: loop body
LE: loop exit
PB: predicated region body
PF: predicated region fallthrough
CT: control target
= control target key end

     0   :  { %v113_v1 = vmov 0   ;;  %s148_s0 = inlined_call_operand.vmem [shape: f32[8,128], index: 0, kind: input, shape index: {}]   ;;  %s149_s1 = inlined_call_operand.vmem [shape: s32[1,128], index: 1, kind: input, shape index: {}]   ;;  %s150_s2 = inlined_call_operand.vmem [shape: f32[8,1], index: 2, kind: input, shape index: {}]   ;;  %s151_s3 = inlined_call_operand.hbm [shape: f32[1,128], index: 3, kind: output, shape index: {}]  }
   0x1   :  { %v17_v0 = vld [vmem:[%s150_s2] sm:$0xff]  ;;  %86 = vset.pattern.permute.xlu0 %v113_v1 }
   0x2   :  { %8 = vsyncpa [#allocation3], 0  ;;  %54 = vperm.xlu0 %86, %v17_v0   ;;  %v15_v2 = vld [vmem:[%s148_s0] sm:$0xff]  ;;  %v18_v14 = vlaneseq  ;;  %v114_v20 = vmov 0.0   ;;  %s115_s0 = smov [#allocation2]  }
   0x3   :  { %v27_v3 = vrot.slane %v15_v2, 4  ;;  %v81_v17 = vld [vmem:[%s149_s1] ss:$0 sm:$0xff]  ;;  %s73_s1 = sshll.u32 %s115_s0, 4  ;;  %s74_s1 = int_to_ptr.vmem [resolvable:$true] %s73_s1 }
   0x4   :  { %v19_v16 = vshrl.u32 %v18_v14, 7  ;;  %s91_s17 = scalar_lea.vmem %s74_s1, 16  ;;  %s95_s18 = scalar_lea.vmem %s74_s1, 32 }
   0x5   :  { %v28_v4 = vmax.f32 %v15_v2, %v27_v3  ;;  %p92_p0 = scmp.ne.s32.totalorder %s74_s1, %s91_s17  ;;  %p96_p1 = scmp.lt.s32.totalorder %s74_s1, %s74_s1 }
   0x6   :  { %vm24_vm0 = vcmp.eq.s32.totalorder %v19_v16, %v81_v17  ;;  %p97_p2 = scmp.lt.s32.totalorder %s95_s18, %s91_s17 }
   0x7   :  { %v29_v5 = vrot.slane %v28_v4, 2  ;;  %v82_v21 = vsel %vm24_vm0, 1.0, %v114_v20 }
   0x8   :  { %v45_v22 = vmul.f32 %v82_v21, %v15_v2  ;;  %p98_p3 = por %p97_p2, %p96_p1 }
   0x9   :  { %v30_v6 = vmax.f32 %v28_v4, %v29_v5 }
   0xa   :  { %v46_v24 = vrot.slane %v45_v22, 4  ;;  %p99_p4 = pnand %p98_p3, %p92_p0 }
   0xb   :  { %v31_v7 = vrot.slane %v30_v6, 1 }
   0xc   :  { %v47_v25 = vadd.f32 %v46_v24, %v45_v22 }
   0xd   :  { %v32_v8 = vmax.f32 %v30_v6, %v31_v7 }
   0xe   :  { %v48_v26 = vrot.slane %v47_v25, 2 }
   0xf   :  { %v33_v9 = vsub.f32 %v15_v2, %v32_v8 }
  0x10   :  { %v49_v27 = vadd.f32 %v48_v26, %v47_v25 }
  0x11   :  { %v34_v10 = vmul.f32 1.442695, %v33_v9 }
  0x12   :  { %v50_v33 = vrot.slane %v49_v27, 1 }
  0x13   :  { %87 = vpow2.f32 %v34_v10 }
  0x14   :  { %v51_v37 = vadd.f32 %v50_v33, %v49_v27 }
  0x20   :  { %v88_v11 = vpop.eup %87 }
  0x21   :  { %v36_v12 = vrot.slane %v88_v11, 4 }
  0x23   :  { %v37_v13 = vadd.f32 %v88_v11, %v36_v12 }
  0x25   :  { %v38_v15 = vrot.slane %v37_v13, 2 }
  0x27   :  { %v39_v18 = vadd.f32 %v38_v15, %v37_v13 }
  0x29   :  { %v40_v19 = vrot.slane %v39_v18, 1 }
  0x2b   :  { %v41_v23 = vadd.f32 %v40_v19, %v39_v18 }
  0x2d   :  { %89 = vlog2.f32 %v41_v23 }
  0x3a   :  { %v90_v28 = vpop.eup %89 }
  0x3b   :  { %v43_v32 = vmul.f32 0.6931472, %v90_v28 }
  0x3d   :  { %v44_v36 = vadd.f32 %v43_v32, %v32_v8 }
  0x3f   :  { %v64_v40 = vsub.f32 %v44_v36, %v51_v37 }
  0x7d   :  { %v55_v29 = vpop.permute.xlu0 %54 }
  0x7e   :  { %v57_v30 = vmul.f32 %v82_v21, %v55_v29 }
  0x80   :  { %v58_v31 = vrot.slane %v57_v30, 4 }
  0x82   :  { %v59_v34 = vadd.f32 %v58_v31, %v57_v30 }
  0x84   :  { %v60_v35 = vrot.slane %v59_v34, 2 }
  0x86   :  { %v61_v38 = vadd.f32 %v60_v35, %v59_v34 }
  0x88   :  { %v62_v39 = vrot.slane %v61_v38, 1 }
  0x8a   :  { %v63_v41 = vadd.f32 %v62_v39, %v61_v38 }
  0x8c   :  { %v65_v42 = vmul.f32 %v64_v40, %v63_v41 }
  0x8e   :  { %66 = vst [vmem:[#allocation2] sm:$0x1] %v65_v42 }
  0x8f   :  { %102 = shalt.err (!%p99_p4)
}
  0x90   :  { %76 = dma.vmem_to_hbm [thread:$0]  %s74_s1, 16, %s151_s3, [#allocation3]  }
  0x91   :  { %111 = dma.done.wait [#allocation3], 16  }
  0x92   :  { %112 = vsyncadd [#allocation3], 4294967280 }
  0x93   :  { %80 = vsyncpa [#allocation3], 1 }

</bundles_post_ra>
